<compile_context>
chip_gen: v7x
topology: tpu7x:2x2x1
jax: 0.10.0
libtpu: 0.0.40
codegen_flags: <defaults>
</compile_context>

<pallas_src>
import functools

import jax
import jax.numpy as jnp
from jax.experimental import pallas as pl
from jax.experimental.pallas import tpu as pltpu


def _ensemble_fused_kernel(x_ref, w_ref, b_ref, out_ref, *,
                           num_members, num_classes):
    """One grid step = one batch tile.  All M members fused in one matmul."""
    M = num_members
    C = num_classes

    # [TB, D] @ [D, M*C] -> [TB, M*C] in a single MXU pass (f32 accumulate).
    logits = jnp.dot(x_ref[...], w_ref[...],
                     preferred_element_type=jnp.float32)
    logits = logits + b_ref[...]              # b_ref is [1, M*C]; broadcasts
    preds = jax.nn.sigmoid(logits)            # EUP transcendental, f32

    # View as [TB, M, C] and reduce across the member axis in-register.
    preds3 = preds.reshape(preds.shape[0], M, C)
    mean = jnp.sum(preds3, axis=1) / jnp.float32(M)          # [TB, C]

    if M > 1:
        # Two-pass (centered) unbiased variance: matches torch .var default
        # and is non-negative by construction (no cancellation clamp needed).
        diff = preds3 - mean[:, None, :]
        epistemic = jnp.sum(diff * diff, axis=1) / jnp.float32(M - 1)
    else:
        # TODO(synk): torch .var(unbiased=True) yields NaN for a single member;
        # we emit zeros instead of propagating NaN.
        epistemic = jnp.zeros_like(mean)

    if C > 1:                                  # mirrors shape[-1] > 1 check
        aleatoric = mean * (1.0 - mean)
    else:
        aleatoric = jnp.zeros_like(epistemic)

    total = epistemic + aleatoric

    # One lane-dense packed store: [TB, 2*C] = [mean | total_uncertainty].
    out_ref[...] = jnp.concatenate([mean, total], axis=-1).astype(out_ref.dtype)


def _pick_batch_tile(batch):
    """Largest batch tile (multiple of 8) that evenly divides the batch."""
    for tb in (512, 256, 128, 64, 32, 16, 8):
        if batch % tb == 0:
            return tb
    return batch


def ensemble_forward(x, w_stack, b_stack):
    """Run the ensemble forward pass.

    Args:
      x:        [B, D] float32 inputs.
      w_stack:  [M, D, C] float32 stacked member weights.
      b_stack:  [M, C]    float32 stacked member biases.

    Returns:
      (mean_pred [B, C], total_uncertainty [B, C])
    """
    B, D = x.shape
    M, _, C = w_stack.shape

    # Fuse the member axis into the matmul's output lanes:
    #   W_flat[:, m*C + c] == w_stack[m, :, c]
    w_flat = jnp.transpose(w_stack, (1, 0, 2)).reshape(D, M * C)
    b_flat = b_stack.reshape(1, M * C)

    tb = _pick_batch_tile(B)
    grid = (B // tb,)

    kernel = functools.partial(_ensemble_fused_kernel,
                               num_members=M, num_classes=C)

    packed = pl.pallas_call(
        kernel,
        out_shape=jax.ShapeDtypeStruct((B, 2 * C), jnp.float32),
        grid_spec=pltpu.PrefetchScalarGridSpec(
            num_scalar_prefetch=0,
            grid=grid,
            in_specs=[
                pl.BlockSpec((tb, D), lambda i: (i, 0)),        # batch tile of x
                pl.BlockSpec((D, M * C), lambda i: (0, 0)),     # fused weights (resident)
                pl.BlockSpec((1, M * C), lambda i: (0, 0)),     # fused biases (resident)
            ],
            out_specs=pl.BlockSpec((tb, 2 * C), lambda i: (i, 0)),
        ),
        compiler_params=pltpu.CompilerParams(
            dimension_semantics=("parallel",),      # batch tiles shard across TCs (v7x)
            vmem_limit_bytes=32 * 1024 * 1024,      # explicit cap, fits all generations
        ),
    )(x, w_flat, b_flat)

    return packed[:, :C], packed[:, C:]


def ensemble_forward_ref(x, w_stack, b_stack):
    """Pure-JAX reference matching the PyTorch semantics."""
    preds = jax.nn.sigmoid(jnp.einsum("bd,mdc->mbc", x, w_stack)
                           + b_stack[:, None, :])            # [M, B, C]
    mean = preds.mean(axis=0)
    epistemic = preds.var(axis=0, ddof=1)                    # torch.var default
    if preds.shape[-1] > 1:
        aleatoric = mean * (1.0 - mean)
    else:
        aleatoric = jnp.zeros_like(epistemic)
    return mean, epistemic + aleatoric


if __name__ == "__main__":
    # Small shapes: 4 ensemble members, batch=8, features=32, classes=16.
    M, B, D, C = 4, 8, 32, 16

    key = jax.random.PRNGKey(0)
    kx, kw, kb = jax.random.split(key, 3)
    x = jax.random.normal(kx, (B, D), dtype=jnp.float32)
    w_stack = jax.random.normal(kw, (M, D, C), dtype=jnp.float32) * 0.1
    b_stack = jax.random.normal(kb, (M, C), dtype=jnp.float32) * 0.1

    mean_pred, total_unc = ensemble_forward(x, w_stack, b_stack)
    jax.block_until_ready((mean_pred, total_unc))

    mean_ref, unc_ref = ensemble_forward_ref(x, w_stack, b_stack)
    assert jnp.allclose(mean_pred, mean_ref, atol=1e-5, rtol=1e-5)
    assert jnp.allclose(total_unc, unc_ref, atol=1e-5, rtol=1e-5)

    # TODO(synk): compute_diversity_loss / prune_redundant_members are training
    # utilities outside the forward pass and are not implemented as kernels.
    print("KERNEL_OK")
</pallas_src>

<mosaic_0001>
module attributes {stable_mosaic.version = 11 : i64} {
  func.func @_ensemble_fused_kernel(%arg0: i32, %arg1: memref<8x32xf32, #tpu.memory_space<vmem>>, %arg2: memref<32x64xf32, #tpu.memory_space<vmem>>, %arg3: memref<1x64xf32, #tpu.memory_space<vmem>>, %arg4: memref<8x32xf32, #tpu.memory_space<vmem>>) attributes {dimension_semantics = [#tpu.dimension_semantics<parallel>], iteration_bounds = array<i64: 1>, scalar_prefetch = 0 : i64, scratch_operands = 0 : i64, tpu.core_type = #tpu.core_type<tc>, window_params = [{transform_indices = @transform_0, window_bounds = array<i64: 8, 32>}, {pipeline_mode = #tpu.pipeline_mode<synchronous>, transform_indices = @transform_1, window_bounds = array<i64: 32, 64>}, {pipeline_mode = #tpu.pipeline_mode<synchronous>, transform_indices = @transform_2, window_bounds = array<i64: 1, 64>}, {transform_indices = @transform_3, window_bounds = array<i64: 8, 32>}]} {
    %c0 = arith.constant 0 : index
    %c0_0 = arith.constant 0 : index
    %0 = vector.load %arg1[%c0, %c0_0] : memref<8x32xf32, #tpu.memory_space<vmem>>, vector<8x32xf32>
    %c0_1 = arith.constant 0 : index
    %c0_2 = arith.constant 0 : index
    %1 = vector.load %arg2[%c0_1, %c0_2] : memref<32x64xf32, #tpu.memory_space<vmem>>, vector<32x64xf32>
    %cst = arith.constant dense<0.000000e+00> : vector<8x64xf32>
    %2 = tpu.matmul %0, %1, %cst {dimension_numbers = #tpu.dot_dimension_numbers<[1], [0], [0], [1], [0, 0, 1, 1], [], []>} : vector<8x32xf32>, vector<32x64xf32>, vector<8x64xf32> -> vector<8x64xf32>
    %c0_3 = arith.constant 0 : index
    %c0_4 = arith.constant 0 : index
    %3 = vector.load %arg3[%c0_3, %c0_4] : memref<1x64xf32, #tpu.memory_space<vmem>>, vector<1x64xf32>
    %4 = vector.broadcast %3 : vector<1x64xf32> to vector<8x64xf32>
    %5 = arith.addf %2, %4 : vector<8x64xf32>
    %6 = arith.negf %5 : vector<8x64xf32>
    %7 = math.exp %6 : vector<8x64xf32>
    %cst_5 = arith.constant 1.000000e+00 : f32
    %8 = vector.broadcast %cst_5 : f32 to vector<8x64xf32>
    %9 = arith.addf %8, %7 : vector<8x64xf32>
    %10 = arith.divf %8, %9 : vector<8x64xf32>
    %11 = vector.shape_cast %10 : vector<8x64xf32> to vector<8x4x16xf32>
    %cst_6 = arith.constant dense<0.000000e+00> : vector<8x16xf32>
    %12 = vector.multi_reduction <add>, %11, %cst_6 [1] : vector<8x4x16xf32> to vector<8x16xf32>
    %cst_7 = arith.constant 4.000000e+00 : f32
    %13 = vector.broadcast %cst_7 : f32 to vector<8x16xf32>
    %14 = arith.divf %12, %13 : vector<8x16xf32>
    %15 = vector.shape_cast %14 : vector<8x16xf32> to vector<8x1x16xf32>
    %16 = vector.broadcast %15 : vector<8x1x16xf32> to vector<8x4x16xf32>
    %17 = arith.subf %11, %16 : vector<8x4x16xf32>
    %18 = arith.mulf %17, %17 : vector<8x4x16xf32>
    %cst_8 = arith.constant dense<0.000000e+00> : vector<8x16xf32>
    %19 = vector.multi_reduction <add>, %18, %cst_8 [1] : vector<8x4x16xf32> to vector<8x16xf32>
    %cst_9 = arith.constant 3.000000e+00 : f32
    %20 = vector.broadcast %cst_9 : f32 to vector<8x16xf32>
    %21 = arith.divf %19, %20 : vector<8x16xf32>
    %cst_10 = arith.constant 1.000000e+00 : f32
    %22 = vector.broadcast %cst_10 : f32 to vector<8x16xf32>
    %23 = arith.subf %22, %14 : vector<8x16xf32>
    %24 = arith.mulf %14, %23 : vector<8x16xf32>
    %25 = arith.addf %21, %24 : vector<8x16xf32>
    %26 = tpu.concatenate %14, %25 in 1 : vector<8x16xf32>, vector<8x16xf32> -> vector<8x32xf32>
    %c0_11 = arith.constant 0 : index
    %c0_12 = arith.constant 0 : index
    %27 = vector.load %arg4[%c0_11, %c0_12] : memref<8x32xf32, #tpu.memory_space<vmem>>, vector<8x32xf32>
    tpu.vector_store %arg4[%c0_11, %c0_12], %26 {strides = array<i32>} : memref<8x32xf32, #tpu.memory_space<vmem>>, vector<8x32xf32>,
    return
  }
  func.func @transform_0(%arg0: i32) -> (i32, i32) {
    %c0_i32 = arith.constant 0 : i32
    %c0_i32_0 = arith.constant 0 : i32
    return %arg0, %c0_i32 : i32, i32
  }
  func.func @transform_1(%arg0: i32) -> (i32, i32) {
    %c0_i32 = arith.constant 0 : i32
    %c0_i32_0 = arith.constant 0 : i32
    %c0_i32_1 = arith.constant 0 : i32
    return %c0_i32, %c0_i32_0 : i32, i32
  }
  func.func @transform_2(%arg0: i32) -> (i32, i32) {
    %c0_i32 = arith.constant 0 : i32
    %c0_i32_0 = arith.constant 0 : i32
    %c0_i32_1 = arith.constant 0 : i32
    return %c0_i32, %c0_i32_0 : i32, i32
  }
  func.func @transform_3(%arg0: i32) -> (i32, i32) {
    %c0_i32 = arith.constant 0 : i32
    %c0_i32_0 = arith.constant 0 : i32
    return %arg0, %c0_i32 : i32, i32
  }
}

</mosaic_0001>

<bundles_post_ra>
// kernel: tpu_custom_call.1
= control target key start
LH: loop header
LB: loop body
LE: loop exit
PB: predicated region body
PF: predicated region fallthrough
CT: control target
= control target key end

     0   :  { %8 = vsyncpa [#allocation3], 0  ;;  %s756_s0 = inlined_call_operand.hbm [shape: f32[8,32], index: 0, kind: input, shape index: {}]   ;;  %s757_s1 = inlined_call_operand.hbm [shape: f32[32,64], index: 1, kind: input, shape index: {}]   ;;  %s758_s2 = inlined_call_operand.vmem [shape: f32[1,64], index: 2, kind: input, shape index: {}]   ;;  %s759_s3 = inlined_call_operand.hbm [shape: f32[8,32], index: 3, kind: output, shape index: {}]  }
   0x1   :  { %9 = vsyncpa [#allocation6], 0 }
   0x2   :  { %10 = vsyncpa [#allocation4], 0  ;;  %s557_s12 = smov [#allocation2]   ;;  %s558_s14 = smov [#allocation5]  }
   0x3   :  { %s17_s13 = sshll.u32 %s557_s12, 4  ;;  %s26_s15 = sshll.u32 %s558_s14, 4  ;;  %s18_s13 = int_to_ptr.vmem [resolvable:$true] %s17_s13  ;;  %s591_s15 = int_to_ptr.vmem [resolvable:$true] %s26_s15 }
   0x4   :  { %s485_s18 = scalar_lea.hbm %s756_s0, 128 }
   0x5   :  { %p486_p0 = scmp.ne.s32.totalorder %s756_s0, %s485_s18  ;;  %p489_p1 = scmp.lt.u32.totalorder %s485_s18, %s756_s0 }
   0x7   :  { %p491_p2 = pnand %p489_p1, %p486_p0 }
   0x9   :  { %494 = shalt.err (!%p491_p2)
}
   0xa   :  { %s495_s23 = scalar_lea.vmem %s18_s13, 128  ;;  %p500_p4 = scmp.lt.s32.totalorder %s18_s13, %s18_s13 }
   0xb   :  { %p496_p3 = scmp.ne.s32.totalorder %s18_s13, %s495_s23  ;;  %p501_p5 = scmp.lt.s32.totalorder %s495_s23, %s495_s23 }
   0xd   :  { %p502_p6 = por %p501_p5, %p500_p4 }
   0xf   :  { %p503_p7 = pnand %p502_p6, %p496_p3 }
  0x11   :  { %506 = shalt.err (!%p503_p7)
}
  0x12   :  { %20 = dma.hbm_to_vmem [thread:$0]  %s756_s0, 128, %s18_s13, [#allocation3]  }
  0x13   :  { %s507_s28 = scalar_lea.hbm %s757_s1, 512 }
  0x14   :  { %p508_p8 = scmp.ne.s32.totalorder %s757_s1, %s507_s28  ;;  %p511_p9 = scmp.lt.u32.totalorder %s507_s28, %s757_s1 }
  0x16   :  { %p513_p10 = pnand %p511_p9, %p508_p8 }
  0x18   :  { %516 = shalt.err (!%p513_p10)
}
  0x19   :  { %s517_s6 = scalar_lea.vmem %s591_s15, 512  ;;  %p522_p12 = scmp.lt.s32.totalorder %s591_s15, %s591_s15 }
  0x1a   :  { %p518_p11 = scmp.ne.s32.totalorder %s591_s15, %s517_s6  ;;  %p523_p13 = scmp.lt.s32.totalorder %s517_s6, %s517_s6 }
  0x1c   :  { %p524_p0 = por %p523_p13, %p522_p12 }
  0x1e   :  { %p525_p1 = pnand %p524_p0, %p518_p11 }
  0x20   :  { %528 = shalt.err (!%p525_p1)
}
  0x21   :  { %s559_s0 = smov 128   ;;  %s560_s7 = smov 8  }
  0x22   :  { %32 = dma.hbm_to_vmem [thread:$0]  %s757_s1, 512, %s591_s15, [#allocation6], %s559_s0, %s559_s0, %s560_s7  }
  0x23   :  { %551 = dma.done.wait [#allocation3], 128  }
  0x24   :  { %552 = vsyncadd [#allocation3], 4294967168 }
  0x25   :  { %553 = dma.done.wait [#allocation6], 512  }
  0x26   :  { %554 = vsyncadd [#allocation6], 4294966784  ;;  %v561_v0 = vmov 0.0|0.0   ;;  %vm562_vm0 = vmmov 0   ;;  %v563_v1 = vmov 0.0   ;;  %v42_v2 = vld [vmem:[#allocation5] sm:$0xff]  ;;  %v148_v19 = vlaneseq }
  0x27   :  { %461 = vmatprep.subr.bf16.mxu0 %v561_v0  ;;  %458 = vmatprep.mubr.msk.f32.mxu0 %vm562_vm0, %v563_v1  ;;  %v43_v3 = vld [vmem:[#allocation5 + $0x8] sm:$0xff]  ;;  %v44_v4 = vld [vmem:[#allocation5 + $0x10] sm:$0xff]  ;;  %v45_v6 = vld [vmem:[#allocation5 + $0x18] sm:$0xff]  ;;  %vm53_vm1 = vcmask 261120   ;;  %s564_s11 = smov 80   ;;  %s565_s12 = smov 112  }
  0x28   :  { %v462_v5 = vpack.c.bf16 %v43_v3, %v42_v2  ;;  %v465_v7 = vpack.c.bf16 %v45_v6, %v44_v4  ;;  %v41_v8 = vld [vmem:[#allocation2] sm:$0xff]  ;;  %s566_s13 = smov 96   ;;  %v567_v17 = vmov 1983009808   ;;  %v568_v20 = vmov 1934713408  }
  0x29   :  { %v442_v9 = vld [vmem:[%s758_s2] ss:$0 sm:$0xff]  ;;  %v146_v18 = vunpack.c.l.s4 %v567_v17  ;;  %v178_v21 = vunpack.c.l.s4 %v568_v20  ;;  %v149_v23 = vshrl.u32 %v148_v19, 7  ;;  %vm211_vm2 = vcmask 125952   ;;  %s569_s2 = smov 16   ;;  %s570_s14 = smov [#allocation7]  }
  0x2a   :  { %463 = vmatpush3.bf16.msra.mxu0 %v462_v5  ;;  %vm390_vm3 = vcmask 1041409   ;;  %vm392_vm4 = vcmask 1042434   ;;  %vm394_vm5 = vcmask 1043459   ;;  %vm396_vm6 = vcmask 1044484   ;;  %s432_s15 = sshll.u32 %s570_s14, 4  ;;  %s433_s15 = int_to_ptr.vmem [resolvable:$true] %s432_s15 }
  0x2b   :  { %464 = vmatprep.subr.bf16.mxu0 %v561_v0  ;;  %v147_v22 = vunpack.c.0.s8 %v146_v18  ;;  %v179_v26 = vunpack.c.0.s8 %v178_v21  ;;  %vm398_vm7 = vcmask 1045509   ;;  %vm400_vm8 = vcmask 1046534   ;;  %s529_s16 = scalar_lea.vmem %s433_s15, 128  ;;  %p534_p3 = scmp.lt.s32.totalorder %s433_s15, %s433_s15 }
  0x2c   :  { %vm402_vm9 = vcmask 1047559   ;;  %vm423_vm10 = vcmask 130048   ;;  %p530_p2 = scmp.ne.s32.totalorder %s433_s15, %s529_s16  ;;  %p535_p4 = scmp.lt.s32.totalorder %s529_s16, %s529_s16 }
  0x2d   :  { %v150_v27 = vsub.s32 %v147_v22, %v149_v23  ;;  %v182_v33 = vsub.s32 %v179_v26, %v149_v23 }
  0x2e   :  { %466 = vmatpush3.bf16.msra.mxu0 %v465_v7  ;;  %p536_p5 = por %p535_p4, %p534_p3 }
  0x30   :  { %p537_p6 = pnand %p536_p5, %p530_p2 }
  0x31   :  { %459 = vmatmul.mubr.msk.f32.vlgmr.msra.gmra.mrb[0].mxu0 %vm53_vm1, %v41_v8 }
 0x104   :  { %v123_v10 = vpop.f32.mrb[0].mxu0 }
 0x105   :  { %v124_v11 = vadd.f32 %v442_v9, %v123_v10  ;;  %v460_v12 = vpop.f32.mrb[1].mxu0 }
 0x107   :  { %v444_v13 = vmul.f32 -1.442695, %v124_v11 }
 0x109   :  { %481 = vpow2.f32 %v444_v13 }
 0x113   :  { %v482_v14 = vpop.eup %481 }
 0x114   :  { %v130_v15 = vadd.f32 1.0, %v482_v14 }
 0x116   :  { %483 = vrcp.f32 %v130_v15 }
 0x120   :  { %v484_v16 = vpop.eup %483 }
 0x121   :  { %140 = vrot.lane.b32.xlu1 %v484_v16, %s564_s11  ;;  %134 = vrot.lane.b32.xlu0 %v484_v16, %s565_s12 }
 0x125   :  { %137 = vrot.lane.b32.xlu0 %v484_v16, %s566_s13 }
 0x193   :  { %v141_v24 = vpop.permute.xlu1 %140  ;;  %v135_v25 = vpop.permute.xlu0 %134 }
 0x194   :  { %v159_v28 = vcombine.low %v135_v25, %v141_v24  ;;  %v160_v29 = vcombine.high %v135_v25, %v141_v24 }
 0x196   :  { %v167_v34 = vrot.slane %v159_v28, %v150_v27  ;;  %v174_v35 = vrot.slane %v160_v29, %v150_v27 }
 0x197   :  { %v138_v30 = vpop.permute.xlu0 %137 }
 0x198   :  { %v143_v31 = vcombine.low %v484_v16, %v138_v30  ;;  %v144_v32 = vcombine.high %v484_v16, %v138_v30 }
 0x19a   :  { %v151_v36 = vrot.slane %v143_v31, %v150_v27  ;;  %v158_v37 = vrot.slane %v144_v32, %v150_v27 }
 0x19c   :  { %v175_v38 = vcombine.low %v151_v36, %v167_v34  ;;  %v176_v39 = vcombine.high %v151_v36, %v167_v34  ;;  %v191_v40 = vcombine.low %v158_v37, %v174_v35  ;;  %v192_v41 = vcombine.high %v158_v37, %v174_v35 }
 0x19e   :  { %v627_v42 = vrot.slane %v175_v38, %v182_v33  ;;  %v629_v43 = vrot.slane %v176_v39, %v182_v33  ;;  %v631_v44 = vrot.slane %v191_v40, %v182_v33  ;;  %v633_v45 = vrot.slane %v192_v41, %v182_v33 }
 0x1a0   :  { %v637_v46 = vcombine.high %v627_v42, %v563_v1  ;;  %v641_v47 = vcombine.high %v629_v43, %v563_v1  ;;  %v645_v48 = vcombine.high %v631_v44, %v563_v1  ;;  %v649_v49 = vcombine.high %v633_v45, %v563_v1 }
 0x1a1   :  { %v212_v50 = vsel %vm211_vm2, %v627_v42, 0.0  ;;  %v226_v51 = vsel %vm211_vm2, %v629_v43, 0.0  ;;  %v240_v52 = vsel %vm211_vm2, %v631_v44, 0.0  ;;  %v254_v53 = vsel %vm211_vm2, %v633_v45, 0.0 }
 0x1a2   :  { %v213_v54 = vrot.slane %v212_v50, 4  ;;  %v219_v55 = vsel %vm211_vm2, %v637_v46, 0.0  ;;  %v227_v56 = vrot.slane %v226_v51, 4  ;;  %v233_v57 = vsel %vm211_vm2, %v641_v47, 0.0 }
 0x1a3   :  { %v220_v58 = vrot.slane %v219_v55, 4  ;;  %v234_v59 = vrot.slane %v233_v57, 4  ;;  %v241_v60 = vrot.slane %v240_v52, 4  ;;  %v247_v61 = vsel %vm211_vm2, %v645_v48, 0.0 }
 0x1a4   :  { %v214_v62 = vadd.f32 %v213_v54, %v212_v50  ;;  %v228_v63 = vadd.f32 %v227_v56, %v226_v51  ;;  %v248_v0 = vrot.slane %v247_v61, 4  ;;  %v255_v1 = vrot.slane %v254_v53, 4 }
 0x1a5   :  { %v221_v2 = vadd.f32 %v220_v58, %v219_v55  ;;  %v235_v3 = vadd.f32 %v234_v59, %v233_v57  ;;  %v242_v4 = vadd.f32 %v241_v60, %v240_v52  ;;  %v261_v5 = vsel %vm211_vm2, %v649_v49, 0.0 }
 0x1a6   :  { %v215_v6 = vrot.slane %v214_v62, 2  ;;  %v229_v7 = vrot.slane %v228_v63, 2  ;;  %v249_v8 = vadd.f32 %v248_v0, %v247_v61  ;;  %v256_v9 = vadd.f32 %v255_v1, %v254_v53 }
 0x1a7   :  { %v222_v10 = vrot.slane %v221_v2, 2  ;;  %v236_v11 = vrot.slane %v235_v3, 2  ;;  %v243_v12 = vrot.slane %v242_v4, 2  ;;  %v262_v13 = vrot.slane %v261_v5, 4 }
 0x1a8   :  { %v216_v14 = vadd.f32 %v215_v6, %v214_v62  ;;  %v230_v15 = vadd.f32 %v229_v7, %v228_v63  ;;  %v250_v16 = vrot.slane %v249_v8, 2  ;;  %v257_v17 = vrot.slane %v256_v9, 2 }
 0x1a9   :  { %v223_v18 = vadd.f32 %v222_v10, %v221_v2  ;;  %v237_v19 = vadd.f32 %v236_v11, %v235_v3  ;;  %v244_v20 = vadd.f32 %v243_v12, %v242_v4  ;;  %v263_v21 = vadd.f32 %v262_v13, %v261_v5 }
 0x1aa   :  { %v217_v22 = vrot.slane %v216_v14, 1  ;;  %v231_v23 = vrot.slane %v230_v15, 1  ;;  %v251_v24 = vadd.f32 %v250_v16, %v249_v8  ;;  %v258_v25 = vadd.f32 %v257_v17, %v256_v9 }
 0x1ab   :  { %v224_v26 = vrot.slane %v223_v18, 1  ;;  %v238_v27 = vrot.slane %v237_v19, 1  ;;  %v245_v28 = vrot.slane %v244_v20, 1  ;;  %v264_v29 = vrot.slane %v263_v21, 2 }
 0x1ac   :  { %v218_v30 = vadd.f32 %v217_v22, %v216_v14  ;;  %v232_v31 = vadd.f32 %v231_v23, %v230_v15  ;;  %v252_v32 = vrot.slane %v251_v24, 1  ;;  %v259_v33 = vrot.slane %v258_v25, 1 }
 0x1ad   :  { %v225_v34 = vadd.f32 %v224_v26, %v223_v18  ;;  %v239_v35 = vadd.f32 %v238_v27, %v237_v19  ;;  %v246_v36 = vadd.f32 %v245_v28, %v244_v20  ;;  %v265_v37 = vadd.f32 %v264_v29, %v263_v21 }
 0x1ae   :  { %v253_v38 = vadd.f32 %v252_v32, %v251_v24  ;;  %v260_v39 = vadd.f32 %v259_v33, %v258_v25  ;;  %v667_v40 = vmul.f32 0.25, %v218_v30  ;;  %v669_v41 = vmul.f32 0.25, %v232_v31 }
 0x1af   :  { %v266_v50 = vrot.slane %v265_v37, 1  ;;  %v671_v51 = vmul.f32 0.25, %v225_v34  ;;  %v673_v52 = vmul.f32 0.25, %v239_v35  ;;  %v675_v53 = vmul.f32 0.25, %v246_v36 }
 0x1b0   :  { %v677_v54 = vmul.f32 0.25, %v253_v38  ;;  %v679_v55 = vmul.f32 0.25, %v260_v39  ;;  %v277_v56 = vsub.f32 %v627_v42, %v667_v40  ;;  %v279_v57 = vsub.f32 %v629_v43, %v669_v41 }
 0x1b1   :  { %v267_v58 = vadd.f32 %v266_v50, %v265_v37  ;;  %v278_v59 = vsub.f32 %v637_v46, %v671_v51  ;;  %v280_v60 = vsub.f32 %v641_v47, %v673_v52  ;;  %v281_v61 = vsub.f32 %v631_v44, %v675_v53 }
 0x1b2   :  { %v282_v62 = vsub.f32 %v645_v48, %v677_v54  ;;  %v283_v63 = vsub.f32 %v633_v45, %v679_v55  ;;  %v285_v42 = vmul.f32 %v277_v56, %v277_v56  ;;  %v287_v0 = vmul.f32 %v279_v57, %v279_v57 }
 0x1b3   :  { %v695_v1 = vmul.f32 0.25, %v267_v58  ;;  %v286_v43 = vmul.f32 %v278_v59, %v278_v59  ;;  %v288_v2 = vmul.f32 %v280_v60, %v280_v60  ;;  %v289_v3 = vmul.f32 %v281_v61, %v281_v61 }
 0x1b4   :  { %v290_v46 = vmul.f32 %v282_v62, %v282_v62  ;;  %v291_v4 = vmul.f32 %v283_v63, %v283_v63  ;;  %v293_v47 = vsel %vm211_vm2, %v285_v42, 0.0  ;;  %v307_v5 = vsel %vm211_vm2, %v287_v0, 0.0 }
 0x1b5   :  { %v284_v44 = vsub.f32 %v649_v49, %v695_v1  ;;  %v294_v48 = vrot.slane %v293_v47, 4  ;;  %v300_v6 = vsel %vm211_vm2, %v286_v43, 0.0  ;;  %v308_v45 = vrot.slane %v307_v5, 4 }
 0x1b6   :  { %v301_v7 = vrot.slane %v300_v6, 4  ;;  %v314_v8 = vsel %vm211_vm2, %v288_v2, 0.0  ;;  %v321_v9 = vsel %vm211_vm2, %v289_v3, 0.0  ;;  %v328_v10 = vsel %vm211_vm2, %v290_v46, 0.0 }
 0x1b7   :  { %v292_v11 = vmul.f32 %v284_v44, %v284_v44  ;;  %v295_v12 = vadd.f32 %v294_v48, %v293_v47  ;;  %v309_v13 = vadd.f32 %v308_v45, %v307_v5  ;;  %v315_v14 = vrot.slane %v314_v8, 4 }
 0x1b8   :  { %v302_v15 = vadd.f32 %v301_v7, %v300_v6  ;;  %v322_v16 = vrot.slane %v321_v9, 4  ;;  %v329_v17 = vrot.slane %v328_v10, 4  ;;  %v335_v49 = vsel %vm211_vm2, %v291_v4, 0.0 }
 0x1b9   :  { %v296_v18 = vrot.slane %v295_v12, 2  ;;  %v310_v19 = vrot.slane %v309_v13, 2  ;;  %v316_v20 = vadd.f32 %v315_v14, %v314_v8  ;;  %v336_v21 = vrot.slane %v335_v49, 4 }
 0x1ba   :  { %v303_v22 = vrot.slane %v302_v15, 2  ;;  %v323_v23 = vadd.f32 %v322_v16, %v321_v9  ;;  %v330_v24 = vadd.f32 %v329_v17, %v328_v10  ;;  %v342_v25 = vsel %vm211_vm2, %v292_v11, 0.0 }
 0x1bb   :  { %v297_v26 = vadd.f32 %v296_v18, %v295_v12  ;;  %v311_v27 = vadd.f32 %v310_v19, %v309_v13  ;;  %v317_v28 = vrot.slane %v316_v20, 2  ;;  %v337_v29 = vadd.f32 %v336_v21, %v335_v49 }
 0x1bc   :  { %v304_v30 = vadd.f32 %v303_v22, %v302_v15  ;;  %v324_v31 = vrot.slane %v323_v23, 2  ;;  %v331_v32 = vrot.slane %v330_v24, 2  ;;  %v343_v33 = vrot.slane %v342_v25, 4 }
 0x1bd   :  { %v298_v34 = vrot.slane %v297_v26, 1  ;;  %v312_v35 = vrot.slane %v311_v27, 1  ;;  %v318_v36 = vadd.f32 %v317_v28, %v316_v20  ;;  %v338_v37 = vrot.slane %v337_v29, 2 }
 0x1be   :  { %v305_v38 = vrot.slane %v304_v30, 1  ;;  %v325_v39 = vadd.f32 %v324_v31, %v323_v23  ;;  %v332_v50 = vadd.f32 %v331_v32, %v330_v24  ;;  %v344_v56 = vadd.f32 %v343_v33, %v342_v25 }
 0x1bf   :  { %v319_v57 = vrot.slane %v318_v36, 1  ;;  %v339_v58 = vadd.f32 %v338_v37, %v337_v29  ;;  %v299_v62 = vadd.f32 %v298_v34, %v297_v26  ;;  %v313_v42 = vadd.f32 %v312_v35, %v311_v27 }
 0x1c0   :  { %v326_v59 = vrot.slane %v325_v39, 1  ;;  %v333_v60 = vrot.slane %v332_v50, 1  ;;  %v345_v61 = vrot.slane %v344_v56, 2  ;;  %v306_v63 = vadd.f32 %v305_v38, %v304_v30 }
 0x1c1   :  { %v340_v0 = vrot.slane %v339_v58, 1  ;;  %v320_v2 = vadd.f32 %v319_v57, %v318_v36  ;;  %v358_v3 = vsub.f32 1.0, %v667_v40  ;;  %v359_v46 = vsub.f32 1.0, %v671_v51 }
 0x1c2   :  { %v346_v43 = vadd.f32 %v345_v61, %v344_v56  ;;  %v327_v4 = vadd.f32 %v326_v59, %v325_v39  ;;  %v334_v47 = vadd.f32 %v333_v60, %v332_v50  ;;  %v360_v44 = vsub.f32 1.0, %v669_v41 }
 0x1c3   :  { %v350_v48 = vmul.f32 0.33333334, %v299_v62  ;;  %v351_v6 = vmul.f32 0.33333334, %v306_v63  ;;  %v361_v45 = vsub.f32 1.0, %v673_v52  ;;  %v341_v8 = vadd.f32 %v340_v0, %v339_v58 }
 0x1c4   :  { %v347_v5 = vrot.slane %v346_v43, 1  ;;  %v352_v7 = vmul.f32 0.33333334, %v313_v42  ;;  %v362_v10 = vsub.f32 1.0, %v675_v53  ;;  %v353_v11 = vmul.f32 0.33333334, %v320_v2 }
 0x1c5   :  { %v363_v12 = vsub.f32 1.0, %v677_v54  ;;  %v366_v13 = vmul.f32 %v358_v3, %v667_v40  ;;  %v367_v14 = vmul.f32 %v359_v46, %v671_v51  ;;  %v354_v15 = vmul.f32 0.33333334, %v327_v4 }
 0x1c6   :  { %v348_v9 = vadd.f32 %v347_v5, %v346_v43  ;;  %v355_v16 = vmul.f32 0.33333334, %v334_v47  ;;  %v364_v17 = vsub.f32 1.0, %v679_v55  ;;  %v368_v49 = vmul.f32 %v360_v44, %v669_v41 }
 0x1c7   :  { %v365_v18 = vsub.f32 1.0, %v695_v1  ;;  %v369_v19 = vmul.f32 %v361_v45, %v673_v52  ;;  %v374_v20 = vadd.f32 %v366_v13, %v350_v48  ;;  %v375_v21 = vadd.f32 %v367_v14, %v351_v6 }
 0x1c8   :  { %v356_v22 = vmul.f32 0.33333334, %v341_v8  ;;  %v357_v23 = vmul.f32 0.33333334, %v348_v9  ;;  %v370_v24 = vmul.f32 %v362_v10, %v675_v53  ;;  %v376_v25 = vadd.f32 %v368_v49, %v352_v7 }
 0x1c9   :  { %v371_v26 = vmul.f32 %v363_v12, %v677_v54  ;;  %v377_v27 = vadd.f32 %v369_v19, %v353_v11  ;;  %v413_v28 = vsel %vm390_vm3, %v375_v21, %v374_v20  ;;  %v391_v29 = vsel %vm390_vm3, %v671_v51, %v667_v40 }
 0x1ca   :  { %v372_v30 = vmul.f32 %v364_v17, %v679_v55  ;;  %v378_v31 = vadd.f32 %v370_v24, %v354_v15  ;;  %v414_v32 = vsel %vm392_vm4, %v376_v25, %v413_v28  ;;  %v393_v33 = vsel %vm392_vm4, %v669_v41, %v391_v29 }
 0x1cb   :  { %v373_v34 = vmul.f32 %v365_v18, %v695_v1  ;;  %v379_v35 = vadd.f32 %v371_v26, %v355_v16  ;;  %v415_v36 = vsel %vm394_vm5, %v377_v27, %v414_v32  ;;  %v395_v37 = vsel %vm394_vm5, %v673_v52, %v393_v33 }
 0x1cc   :  { %v380_v38 = vadd.f32 %v372_v30, %v356_v22  ;;  %v416_v40 = vsel %vm396_vm6, %v378_v31, %v415_v36  ;;  %v397_v51 = vsel %vm396_vm6, %v675_v53, %v395_v37 }
 0x1cd   :  { %v381_v39 = vadd.f32 %v373_v34, %v357_v23  ;;  %v417_v50 = vsel %vm398_vm7, %v379_v35, %v416_v40  ;;  %v399_v41 = vsel %vm398_vm7, %v677_v54, %v397_v51 }
 0x1ce   :  { %v418_v56 = vsel %vm400_vm8, %v380_v38, %v417_v50  ;;  %v401_v57 = vsel %vm400_vm8, %v679_v55, %v399_v41 }
 0x1cf   :  { %v419_v58 = vsel %vm402_vm9, %v381_v39, %v418_v56  ;;  %v403_v52 = vsel %vm402_vm9, %v695_v1, %v401_v57 }
 0x1d0   :  { %420 = vrot.lane.b32.xlu1 %v419_v58, %s569_s2 }
 0x242   :  { %v421_v53 = vpop.permute.xlu1 %420 }
 0x243   :  { %v424_v59 = vsel %vm423_vm10, %v403_v52, %v421_v53 }
 0x244   :  { %425 = vst.msk [vmem:[#allocation7] sm:$0xff] %vm53_vm1, %v424_v59 }
 0x245   :  { %540 = shalt.err (!%p537_p6)
}
 0x246   :  { %s541_s19 = scalar_lea.hbm %s759_s3, 128 }
 0x247   :  { %p542_p7 = scmp.ne.s32.totalorder %s759_s3, %s541_s19  ;;  %p545_p8 = scmp.lt.u32.totalorder %s541_s19, %s759_s3 }
 0x249   :  { %p547_p9 = pnand %p545_p8, %p542_p7 }
 0x24b   :  { %550 = shalt.err (!%p547_p9)
}
 0x24c   :  { %435 = dma.vmem_to_hbm [thread:$0]  %s433_s15, 128, %s759_s3, [#allocation4]  }
 0x24d   :  { %555 = dma.done.wait [#allocation4], 128  }
 0x24e   :  { %556 = vsyncadd [#allocation4], 4294967168 }
 0x24f   :  { %439 = vsyncpa [#allocation3], 1 }
 0x250   :  { %440 = vsyncpa [#allocation6], 1 }
 0x251   :  { %441 = vsyncpa [#allocation4], 1 }

</bundles_post_ra>
